<compile_context>
chip_gen: v7x
topology: tpu7x:2x2x1
jax: 0.10.0
libtpu: 0.0.40
codegen_flags: <defaults>
</compile_context>

<pallas_src>
import jax
import jax.numpy as jnp
import numpy as np
from jax.experimental import pallas as pl
from jax.experimental.pallas import tpu as pltpu


def _band3x3(k, W):
    """Fold dx taps + `padding=1` W-boundary handling into a banded weight matrix.

    k: (3, 3, Cin, Cout) HWIO weights -> (3, W*Cin, W*Cout) with
        M[dy, wi*Cin+ci, wo*Cout+co] = k[dy, wi-wo+1, ci, co]  if |wi-wo| <= 1 else 0
    so that  conv(x)[h, :] = sum_dy  x_rowpad[h+dy, :] @ M[dy]
    where x_rowpad has one zero row above and below the image.
    """
    kh, kw, Cin, Cout = k.shape
    e = jnp.arange(kw)[:, None, None]          # dx tap
    wi = jnp.arange(W)[None, :, None]          # input column
    wo = jnp.arange(W)[None, None, :]          # output column
    sel = (wi == wo + e - 1).astype(k.dtype)   # (kw, W, W)
    M = jnp.einsum('eio,decf->dicof', sel, k)  # (kh, W, Cin, W, Cout)
    return M.reshape(kh, W * Cin, W * Cout)


def _make_block_kernel(Nb, H, fold_k):
    """Build the fused kernel for Nb images per grid step."""
    P = H + 2           # padded rows per image inside the stacked scratches
    M = Nb * P - 2      # matmul M dim: all valid output rows + inter-image junk rows

    def kernel(x_ref, w1_ref, b1_ref, w2_ref, b2_ref, o_ref,
               xp_ref, mp_ref, xcol_ref=None, mcol_ref=None):
        # x_ref : (Nb, H, W*Cin)   inputs, (w, c) flattened on the lane axis
        # w1/w2 : banded weights   fold_k: (3*K, N)   else: (3, K, N)
        # b1/b2 : (1, W*C)         biases tiled over w (f32)
        # o_ref : (Nb, H, W*Cout)  lane-dense output
        # xp/mp : (Nb*(H+2), W*C)  stacked row-padded input / mid activation (VMEM only)
        # xcol/mcol: (M, 3*W*C)    im2col LHS scratches (only when fold_k)
        K1 = xp_ref.shape[1]
        K2 = mp_ref.shape[1]

        # Re-zero the constant pad rows every step (a handful of single-row stores).
        # NOT init-once under pl.when(program_id==0): with a megacore-split "parallel"
        # grid each core has its own scratch and never sees program_id 0.
        zx = jnp.zeros((1, K1), xp_ref.dtype)
        for n in range(Nb):
            xp_ref[n * P:n * P + 1, :] = zx                  # top pad of image n
            xp_ref[n * P + H + 1:n * P + H + 2, :] = zx      # bottom pad of image n
        zm = jnp.zeros((1, K2), mp_ref.dtype)
        mp_ref[0:1, :] = zm                                  # interior mp pad rows are
        mp_ref[Nb * P - 1:Nb * P, :] = zm                    # rewritten via the mask below

        # Stack the Nb input images (between their pad rows) into one tall LHS.
        for n in range(Nb):
            xp_ref[n * P + 1:n * P + 1 + H, :] = x_ref[n].astype(xp_ref.dtype)

        # ---- conv1 ----
        if fold_k:
            # im2col along K: one MXU matmul with K = 3*W*Cin (fills v6e/v7x 256-deep MXU).
            for dy in range(3):
                xcol_ref[:, dy * K1:(dy + 1) * K1] = xp_ref[dy:dy + M, :]
            acc1 = jnp.dot(xcol_ref[...], w1_ref[...],
                           preferred_element_type=jnp.float32)
        else:
            acc1 = jnp.zeros((M, w1_ref.shape[-1]), jnp.float32)
            for dy in range(3):                # 3 MXU matmuls, K = W*Cin
                acc1 += jnp.dot(xp_ref[dy:dy + M, :], w1_ref[dy],
                                preferred_element_type=jnp.float32)
        mid = jnp.maximum(acc1 + b1_ref[...], 0.0)           # (M, W*Cmid), f32
        if Nb > 1:
            # Zero the junk rows between images: they land exactly on the pad-row
            # positions of mp, so masking them both discards them and re-pads mp.
            r = jax.lax.broadcasted_iota(jnp.int32, (M, 1), 0)
            mid = jnp.where((r % P) < H, mid, 0.0)
        mp_ref[1:1 + M, :] = mid.astype(mp_ref.dtype)

        # ---- conv2: mid activation never leaves VMEM (fused) ----
        if fold_k:
            for dy in range(3):
                mcol_ref[:, dy * K2:(dy + 1) * K2] = mp_ref[dy:dy + M, :]
            acc2 = jnp.dot(mcol_ref[...], w2_ref[...],
                           preferred_element_type=jnp.float32)
        else:
            acc2 = jnp.zeros((M, w2_ref.shape[-1]), jnp.float32)
            for dy in range(3):                # 3 MXU matmuls, K = W*Cmid
                acc2 += jnp.dot(mp_ref[dy:dy + M, :], w2_ref[dy],
                                preferred_element_type=jnp.float32)
        out = jnp.maximum(acc2 + b2_ref[...], 0.0)           # (M, W*Cout), f32

        # Discard the junk boundary rows: copy only the H valid rows of each image.
        for n in range(Nb):
            o_ref[n] = out[n * P:n * P + H, :].astype(o_ref.dtype)

    return kernel


def block_forward_prepared(x_nhwc, w1b, b1t, w2b, b2t, *,
                           compute_dtype=jnp.float32, out_dtype=jnp.float32,
                           nb=None, fold_k=True):
    """x_nhwc: (N,H,W,Cin); w1b/w2b: cached (3, W*Cin, W*Cout) banded weights;
    b1t/b2t: cached (1, W*Cout) tiled biases. Returns (N,H,W,Cout) in out_dtype."""
    N, H, W, Cin = x_nhwc.shape
    K1, N1 = w1b.shape[1], w1b.shape[2]          # W*Cin,  W*Cmid
    K2, N2 = w2b.shape[1], w2b.shape[2]          # W*Cmid, W*Cout
    Cout = N2 // W

    if nb is None:
        # Fold as many images per step as possible while keeping >=2 "parallel" grid
        # steps (v7x has 2 TensorCores; v5e/v6e have 1, so the extra step is harmless).
        nb = N // 2 if (N >= 2 and N % 2 == 0) else N
    assert N % nb == 0, "batch must be divisible by nb"
    P = H + 2
    M = nb * P - 2

    x2d = x_nhwc.reshape(N, H, K1).astype(compute_dtype)   # contiguous, free reshape

    if fold_k:
        # (3, K, N) -> (3K, N) is a contiguous concat along K: free bitcast reshape.
        w1_arg, w2_arg = w1b.reshape(3 * K1, N1), w2b.reshape(3 * K2, N2)
        w1_spec = pl.BlockSpec((3 * K1, N1), lambda g: (0, 0))
        w2_spec = pl.BlockSpec((3 * K2, N2), lambda g: (0, 0))
    else:
        w1_arg, w2_arg = w1b, w2b
        w1_spec = pl.BlockSpec((3, K1, N1), lambda g: (0, 0, 0))
        w2_spec = pl.BlockSpec((3, K2, N2), lambda g: (0, 0, 0))

    scratch = [pltpu.VMEM((nb * P, K1), compute_dtype),     # stacked padded input
               pltpu.VMEM((nb * P, K2), compute_dtype)]     # stacked padded mid act
    if fold_k:
        scratch += [pltpu.VMEM((M, 3 * K1), compute_dtype),  # im2col LHS, conv1
                    pltpu.VMEM((M, 3 * K2), compute_dtype)]  # im2col LHS, conv2

    out2d = pl.pallas_call(
        _make_block_kernel(nb, H, fold_k),
        out_shape=jax.ShapeDtypeStruct((N, H, N2), out_dtype),
        grid_spec=pltpu.PrefetchScalarGridSpec(
            num_scalar_prefetch=0,
            grid=(N // nb,),
            in_specs=[
                pl.BlockSpec((nb, H, K1), lambda g: (g, 0, 0)),
                w1_spec,
                pl.BlockSpec((1, N1), lambda g: (0, 0)),
                w2_spec,
                pl.BlockSpec((1, N2), lambda g: (0, 0)),
            ],
            out_specs=pl.BlockSpec((nb, H, N2), lambda g: (g, 0, 0)),
            scratch_shapes=scratch,
        ),
        compiler_params=pltpu.CompilerParams(
            dimension_semantics=("parallel",)),
    )(x2d, w1_arg, b1t, w2_arg, b2t)

    return out2d.reshape(N, H, W, Cout)


class BlockPallas:
    """conv3x3(pad=1) -> ReLU -> conv3x3(pad=1) -> ReLU, matching the PyTorch Block."""

    def __init__(self, in_channels, mid_channels, out_channels, key,
                 compute_dtype=jnp.float32, out_dtype=None, fold_k=True):
        k1, k2, k3, k4 = jax.random.split(key, 4)
        # Deterministic synthetic init (PyTorch-like uniform fan-in bound), HWIO layout.
        bound1 = 1.0 / np.sqrt(in_channels * 9)
        bound2 = 1.0 / np.sqrt(mid_channels * 9)
        self.w1 = jax.random.uniform(k1, (3, 3, in_channels, mid_channels),
                                     jnp.float32, -bound1, bound1)
        self.b1 = jax.random.uniform(k2, (mid_channels,), jnp.float32, -bound1, bound1)
        self.w2 = jax.random.uniform(k3, (3, 3, mid_channels, out_channels),
                                     jnp.float32, -bound2, bound2)
        self.b2 = jax.random.uniform(k4, (out_channels,), jnp.float32, -bound2, bound2)
        self.compute_dtype = compute_dtype
        self.out_dtype = jnp.float32 if out_dtype is None else out_dtype
        self.fold_k = fold_k
        self._prepared_cache = {}   # W -> (w1b, b1t, w2b, b2t) device buffers

    def _prepared(self, W):
        # Banded weights are the dominant HBM traffic at small N; build them ONCE per
        # spatial width and reuse the device buffers on every forward.
        if W not in self._prepared_cache:
            w1b = _band3x3(self.w1, W).astype(self.compute_dtype)
            w2b = _band3x3(self.w2, W).astype(self.compute_dtype)
            b1t = jnp.tile(self.b1, W).reshape(1, -1).astype(jnp.float32)
            b2t = jnp.tile(self.b2, W).reshape(1, -1).astype(jnp.float32)
            self._prepared_cache[W] = tuple(
                jax.block_until_ready(a) for a in (w1b, b1t, w2b, b2t))
        return self._prepared_cache[W]

    def forward_nhwc(self, x_nhwc, nb=None):
        w1b, b1t, w2b, b2t = self._prepared(x_nhwc.shape[2])
        return block_forward_prepared(x_nhwc, w1b, b1t, w2b, b2t,
                                      compute_dtype=self.compute_dtype,
                                      out_dtype=self.out_dtype,
                                      nb=nb, fold_k=self.fold_k)

    def __call__(self, x_nchw, nb=None):
        # NCHW <-> NHWC only at the module boundary (PyTorch interface parity); an
        # NHWC end-to-end model should call forward_nhwc and skip both transposes.
        x = jnp.transpose(x_nchw, (0, 2, 3, 1))
        y = self.forward_nhwc(x, nb=nb)
        return jnp.transpose(y, (0, 3, 1, 2))


def _reference_forward(x_nchw, blk):
    """Pure-JAX reference (lax.conv) for correctness checking."""
    def conv(x, w, b):
        y = jax.lax.conv_general_dilated(
            x, w, window_strides=(1, 1), padding=((1, 1), (1, 1)),
            dimension_numbers=('NHWC', 'HWIO', 'NHWC'))
        return jnp.maximum(y + b[None, None, None, :], 0.0)

    x = jnp.transpose(x_nchw, (0, 2, 3, 1))
    x = conv(x, blk.w1, blk.b1)
    x = conv(x, blk.w2, blk.b2)
    return jnp.transpose(x, (0, 3, 1, 2))


if __name__ == "__main__":
    key = jax.random.PRNGKey(0)
    kx, kp = jax.random.split(key)

    N, Cin, H, W = 2, 4, 16, 16
    Cmid, Cout = 8, 8

    x = jax.random.normal(kx, (N, Cin, H, W), jnp.float32)

    blk = BlockPallas(Cin, Cmid, Cout, kp)
    ref = _reference_forward(x, blk)

    # Default nb = N//2: 1 image/step, grid=(2,) "parallel" -> both v7x TCs busy.
    out = jax.block_until_ready(blk(x))
    np.testing.assert_allclose(np.asarray(out), np.asarray(ref), rtol=1e-3, atol=1e-3)

    # Batch-folded path: both images stacked into one M = 2*(H+2)-2 = 34 row matmul.
    out_folded = jax.block_until_ready(blk(x, nb=2))
    np.testing.assert_allclose(np.asarray(out_folded), np.asarray(ref), rtol=1e-3, atol=1e-3)

    # Per-dy matmul fallback (fold_k=False), preferable on v5e's 128-deep MXU.
    blk_nofold = BlockPallas(Cin, Cmid, Cout, kp, fold_k=False)
    out_nofold = jax.block_until_ready(blk_nofold(x, nb=2))
    np.testing.assert_allclose(np.asarray(out_nofold), np.asarray(ref), rtol=1e-3, atol=1e-3)

    # bf16 matmul operands + bf16 output (half the HBM writeback), f32 accumulation.
    # Note: the mid activation is double-rounded through bf16, hence the loose tolerance.
    blk_bf16 = BlockPallas(Cin, Cmid, Cout, kp, compute_dtype=jnp.bfloat16,
                           out_dtype=jnp.bfloat16)
    out_bf16 = jax.block_until_ready(blk_bf16(x, nb=2))
    np.testing.assert_allclose(np.asarray(jnp.asarray(out_bf16, jnp.float32)),
                               np.asarray(ref), rtol=1e-1, atol=1e-1)

    print("KERNEL_OK")
</pallas_src>

<mosaic_0001>
module attributes {stable_mosaic.version = 11 : i64} {
  func.func @kernel(%arg0: i32, %arg1: memref<1x16x64xf32, #tpu.memory_space<vmem>>, %arg2: memref<192x128xf32, #tpu.memory_space<vmem>>, %arg3: memref<1x128xf32, #tpu.memory_space<vmem>>, %arg4: memref<384x128xf32, #tpu.memory_space<vmem>>, %arg5: memref<1x128xf32, #tpu.memory_space<vmem>>, %arg6: memref<1x16x128xf32, #tpu.memory_space<vmem>>, %arg7: memref<18x64xf32, #tpu.memory_space<vmem>>, %arg8: memref<18x128xf32, #tpu.memory_space<vmem>>, %arg9: memref<16x192xf32, #tpu.memory_space<vmem>>, %arg10: memref<16x384xf32, #tpu.memory_space<vmem>>) attributes {dimension_semantics = [#tpu.dimension_semantics<parallel>], iteration_bounds = array<i64: 2>, scalar_prefetch = 0 : i64, scratch_operands = 4 : i64, tpu.core_type = #tpu.core_type<tc>, window_params = [{transform_indices = @transform_0, window_bounds = array<i64: 1, 16, 64>}, {pipeline_mode = #tpu.pipeline_mode<synchronous>, transform_indices = @transform_1, window_bounds = array<i64: 192, 128>}, {pipeline_mode = #tpu.pipeline_mode<synchronous>, transform_indices = @transform_2, window_bounds = array<i64: 1, 128>}, {pipeline_mode = #tpu.pipeline_mode<synchronous>, transform_indices = @transform_3, window_bounds = array<i64: 384, 128>}, {pipeline_mode = #tpu.pipeline_mode<synchronous>, transform_indices = @transform_4, window_bounds = array<i64: 1, 128>}, {transform_indices = @transform_5, window_bounds = array<i64: 1, 16, 128>}]} {
    %cst = arith.constant 0.000000e+00 : f32
    %0 = vector.broadcast %cst : f32 to vector<1x64xf32>
    %c0 = arith.constant 0 : index
    %c0_0 = arith.constant 0 : index
    %1 = vector.load %arg7[%c0, %c0_0] : memref<18x64xf32, #tpu.memory_space<vmem>>, vector<1x64xf32>
    tpu.vector_store %arg7[%c0, %c0_0], %0 {strides = array<i32>} : memref<18x64xf32, #tpu.memory_space<vmem>>, vector<1x64xf32>,
    %c17 = arith.constant 17 : index
    %c0_1 = arith.constant 0 : index
    %2 = vector.load %arg7[%c17, %c0_1] : memref<18x64xf32, #tpu.memory_space<vmem>>, vector<1x64xf32>
    tpu.vector_store %arg7[%c17, %c0_1], %0 {strides = array<i32>} : memref<18x64xf32, #tpu.memory_space<vmem>>, vector<1x64xf32>,
    %cst_2 = arith.constant 0.000000e+00 : f32
    %3 = vector.broadcast %cst_2 : f32 to vector<1x128xf32>
    %c0_3 = arith.constant 0 : index
    %c0_4 = arith.constant 0 : index
    %4 = vector.load %arg8[%c0_3, %c0_4] : memref<18x128xf32, #tpu.memory_space<vmem>>, vector<1x128xf32>
    tpu.vector_store %arg8[%c0_3, %c0_4], %3 {strides = array<i32>} : memref<18x128xf32, #tpu.memory_space<vmem>>, vector<1x128xf32>,
    %c17_5 = arith.constant 17 : index
    %c0_6 = arith.constant 0 : index
    %5 = vector.load %arg8[%c17_5, %c0_6] : memref<18x128xf32, #tpu.memory_space<vmem>>, vector<1x128xf32>
    tpu.vector_store %arg8[%c17_5, %c0_6], %3 {strides = array<i32>} : memref<18x128xf32, #tpu.memory_space<vmem>>, vector<1x128xf32>,
    %c0_7 = arith.constant 0 : index
    %c0_8 = arith.constant 0 : index
    %c0_9 = arith.constant 0 : index
    %6 = vector.load %arg1[%c0_7, %c0_8, %c0_9] : memref<1x16x64xf32, #tpu.memory_space<vmem>>, vector<1x16x64xf32>
    %7 = vector.shape_cast %6 : vector<1x16x64xf32> to vector<16x64xf32>
    %c1 = arith.constant 1 : index
    %c0_10 = arith.constant 0 : index
    %8 = vector.load %arg7[%c1, %c0_10] : memref<18x64xf32, #tpu.memory_space<vmem>>, vector<16x64xf32>
    tpu.vector_store %arg7[%c1, %c0_10], %7 {strides = array<i32>} : memref<18x64xf32, #tpu.memory_space<vmem>>, vector<16x64xf32>,
    %c0_11 = arith.constant 0 : index
    %c0_12 = arith.constant 0 : index
    %9 = vector.load %arg7[%c0_11, %c0_12] : memref<18x64xf32, #tpu.memory_space<vmem>>, vector<16x64xf32>
    %c0_13 = arith.constant 0 : index
    %c0_14 = arith.constant 0 : index
    %10 = vector.load %arg9[%c0_13, %c0_14] : memref<16x192xf32, #tpu.memory_space<vmem>>, vector<16x64xf32>
    tpu.vector_store %arg9[%c0_13, %c0_14], %9 {strides = array<i32>} : memref<16x192xf32, #tpu.memory_space<vmem>>, vector<16x64xf32>,
    %c1_15 = arith.constant 1 : index
    %c0_16 = arith.constant 0 : index
    %11 = vector.load %arg7[%c1_15, %c0_16] : memref<18x64xf32, #tpu.memory_space<vmem>>, vector<16x64xf32>
    %c0_17 = arith.constant 0 : index
    %c64 = arith.constant 64 : index
    %12 = vector.load %arg9[%c0_17, %c64] : memref<16x192xf32, #tpu.memory_space<vmem>>, vector<16x64xf32>
    tpu.vector_store %arg9[%c0_17, %c64], %11 {strides = array<i32>} : memref<16x192xf32, #tpu.memory_space<vmem>>, vector<16x64xf32>,
    %c2 = arith.constant 2 : index
    %c0_18 = arith.constant 0 : index
    %13 = vector.load %arg7[%c2, %c0_18] : memref<18x64xf32, #tpu.memory_space<vmem>>, vector<16x64xf32>
    %c0_19 = arith.constant 0 : index
    %c128 = arith.constant 128 : index
    %14 = vector.load %arg9[%c0_19, %c128] : memref<16x192xf32, #tpu.memory_space<vmem>>, vector<16x64xf32>
    tpu.vector_store %arg9[%c0_19, %c128], %13 {strides = array<i32>} : memref<16x192xf32, #tpu.memory_space<vmem>>, vector<16x64xf32>,
    %c0_20 = arith.constant 0 : index
    %c0_21 = arith.constant 0 : index
    %15 = vector.load %arg9[%c0_20, %c0_21] : memref<16x192xf32, #tpu.memory_space<vmem>>, vector<16x192xf32>
    %c0_22 = arith.constant 0 : index
    %c0_23 = arith.constant 0 : index
    %16 = vector.load %arg2[%c0_22, %c0_23] : memref<192x128xf32, #tpu.memory_space<vmem>>, vector<192x128xf32>
    %cst_24 = arith.constant dense<0.000000e+00> : vector<16x128xf32>
    %17 = tpu.matmul %15, %16, %cst_24 {dimension_numbers = #tpu.dot_dimension_numbers<[1], [0], [0], [1], [0, 0, 1, 1], [], []>} : vector<16x192xf32>, vector<192x128xf32>, vector<16x128xf32> -> vector<16x128xf32>
    %c0_25 = arith.constant 0 : index
    %c0_26 = arith.constant 0 : index
    %18 = vector.load %arg3[%c0_25, %c0_26] : memref<1x128xf32, #tpu.memory_space<vmem>>, vector<1x128xf32>
    %19 = vector.broadcast %18 : vector<1x128xf32> to vector<16x128xf32>
    %20 = arith.addf %17, %19 : vector<16x128xf32>
    %cst_27 = arith.constant 0.000000e+00 : f32
    %21 = vector.broadcast %cst_27 : f32 to vector<16x128xf32>
    %22 = arith.maximumf %20, %21 : vector<16x128xf32>
    %c1_28 = arith.constant 1 : index
    %c0_29 = arith.constant 0 : index
    %23 = vector.load %arg8[%c1_28, %c0_29] : memref<18x128xf32, #tpu.memory_space<vmem>>, vector<16x128xf32>
    tpu.vector_store %arg8[%c1_28, %c0_29], %22 {strides = array<i32>} : memref<18x128xf32, #tpu.memory_space<vmem>>, vector<16x128xf32>,
    %c0_30 = arith.constant 0 : index
    %c0_31 = arith.constant 0 : index
    %24 = vector.load %arg8[%c0_30, %c0_31] : memref<18x128xf32, #tpu.memory_space<vmem>>, vector<16x128xf32>
    %c0_32 = arith.constant 0 : index
    %c0_33 = arith.constant 0 : index
    %25 = vector.load %arg10[%c0_32, %c0_33] : memref<16x384xf32, #tpu.memory_space<vmem>>, vector<16x128xf32>
    tpu.vector_store %arg10[%c0_32, %c0_33], %24 {strides = array<i32>} : memref<16x384xf32, #tpu.memory_space<vmem>>, vector<16x128xf32>,
    %c1_34 = arith.constant 1 : index
    %c0_35 = arith.constant 0 : index
    %26 = vector.load %arg8[%c1_34, %c0_35] : memref<18x128xf32, #tpu.memory_space<vmem>>, vector<16x128xf32>
    %c0_36 = arith.constant 0 : index
    %c128_37 = arith.constant 128 : index
    %27 = vector.load %arg10[%c0_36, %c128_37] : memref<16x384xf32, #tpu.memory_space<vmem>>, vector<16x128xf32>
    tpu.vector_store %arg10[%c0_36, %c128_37], %26 {strides = array<i32>} : memref<16x384xf32, #tpu.memory_space<vmem>>, vector<16x128xf32>,
    %c2_38 = arith.constant 2 : index
    %c0_39 = arith.constant 0 : index
    %28 = vector.load %arg8[%c2_38, %c0_39] : memref<18x128xf32, #tpu.memory_space<vmem>>, vector<16x128xf32>
    %c0_40 = arith.constant 0 : index
    %c256 = arith.constant 256 : index
    %29 = vector.load %arg10[%c0_40, %c256] : memref<16x384xf32, #tpu.memory_space<vmem>>, vector<16x128xf32>
    tpu.vector_store %arg10[%c0_40, %c256], %28 {strides = array<i32>} : memref<16x384xf32, #tpu.memory_space<vmem>>, vector<16x128xf32>,
    %c0_41 = arith.constant 0 : index
    %c0_42 = arith.constant 0 : index
    %30 = vector.load %arg10[%c0_41, %c0_42] : memref<16x384xf32, #tpu.memory_space<vmem>>, vector<16x384xf32>
    %c0_43 = arith.constant 0 : index
    %c0_44 = arith.constant 0 : index
    %31 = vector.load %arg4[%c0_43, %c0_44] : memref<384x128xf32, #tpu.memory_space<vmem>>, vector<384x128xf32>
    %cst_45 = arith.constant dense<0.000000e+00> : vector<16x128xf32>
    %32 = tpu.matmul %30, %31, %cst_45 {dimension_numbers = #tpu.dot_dimension_numbers<[1], [0], [0], [1], [0, 0, 1, 1], [], []>} : vector<16x384xf32>, vector<384x128xf32>, vector<16x128xf32> -> vector<16x128xf32>
    %c0_46 = arith.constant 0 : index
    %c0_47 = arith.constant 0 : index
    %33 = vector.load %arg5[%c0_46, %c0_47] : memref<1x128xf32, #tpu.memory_space<vmem>>, vector<1x128xf32>
    %34 = vector.broadcast %33 : vector<1x128xf32> to vector<16x128xf32>
    %35 = arith.addf %32, %34 : vector<16x128xf32>
    %cst_48 = arith.constant 0.000000e+00 : f32
    %36 = vector.broadcast %cst_48 : f32 to vector<16x128xf32>
    %37 = arith.maximumf %35, %36 : vector<16x128xf32>
    %c0_49 = arith.constant 0 : index
    %c0_50 = arith.constant 0 : index
    %c0_51 = arith.constant 0 : index
    %38 = vector.load %arg6[%c0_49, %c0_50, %c0_51] : memref<1x16x128xf32, #tpu.memory_space<vmem>>, vector<1x16x128xf32>
    %39 = vector.shape_cast %38 : vector<1x16x128xf32> to vector<16x128xf32>
    %40 = vector.shape_cast %37 : vector<16x128xf32> to vector<1x16x128xf32>
    tpu.vector_store %arg6[%c0_49, %c0_50, %c0_51], %40 {strides = array<i32>} : memref<1x16x128xf32, #tpu.memory_space<vmem>>, vector<1x16x128xf32>,
    return
  }
  func.func @transform_0(%arg0: i32) -> (i32, i32, i32) {
    %c0_i32 = arith.constant 0 : i32
    %c0_i32_0 = arith.constant 0 : i32
    %c0_i32_1 = arith.constant 0 : i32
    return %arg0, %c0_i32, %c0_i32_0 : i32, i32, i32
  }
  func.func @transform_1(%arg0: i32) -> (i32, i32) {
    %c0_i32 = arith.constant 0 : i32
    %c0_i32_0 = arith.constant 0 : i32
    %c0_i32_1 = arith.constant 0 : i32
    return %c0_i32, %c0_i32_0 : i32, i32
  }
  func.func @transform_2(%arg0: i32) -> (i32, i32) {
    %c0_i32 = arith.constant 0 : i32
    %c0_i32_0 = arith.constant 0 : i32
    %c0_i32_1 = arith.constant 0 : i32
    return %c0_i32, %c0_i32_0 : i32, i32
  }
  func.func @transform_3(%arg0: i32) -> (i32, i32) {
    %c0_i32 = arith.constant 0 : i32
    %c0_i32_0 = arith.constant 0 : i32
    %c0_i32_1 = arith.constant 0 : i32
    return %c0_i32, %c0_i32_0 : i32, i32
  }
  func.func @transform_4(%arg0: i32) -> (i32, i32) {
    %c0_i32 = arith.constant 0 : i32
    %c0_i32_0 = arith.constant 0 : i32
    %c0_i32_1 = arith.constant 0 : i32
    return %c0_i32, %c0_i32_0 : i32, i32
  }
  func.func @transform_5(%arg0: i32) -> (i32, i32, i32) {
    %c0_i32 = arith.constant 0 : i32
    %c0_i32_0 = arith.constant 0 : i32
    %c0_i32_1 = arith.constant 0 : i32
    return %arg0, %c0_i32, %c0_i32_0 : i32, i32, i32
  }
}

</mosaic_0001>

<bundles_post_ra>
// kernel: tpu_custom_call.1
= control target key start
LH: loop header
LB: loop body
LE: loop exit
PB: predicated region body
PF: predicated region fallthrough
CT: control target
= control target key end

     0   :  { %10 = vsyncpa [#allocation7], 0  ;;  %s1517_s0 = inlined_call_operand.hbm [shape: f32[2,16,64], index: 0, kind: input, shape index: {}]   ;;  %s1518_s1 = inlined_call_operand.hbm [shape: f32[192,128], index: 1, kind: input, shape index: {}]   ;;  %s1519_s2 = inlined_call_operand.vmem [shape: f32[1,128], index: 2, kind: input, shape index: {}]   ;;  %s1520_s3 = inlined_call_operand.hbm [shape: f32[384,128], index: 3, kind: input, shape index: {}]   ;;  %s1521_s4 = inlined_call_operand.vmem [shape: f32[1,128], index: 4, kind: input, shape index: {}]   ;;  %s1522_s5 = inlined_call_operand.hbm [shape: f32[2,16,128], index: 5, kind: output, shape index: {}]  }
   0x1   :  { %12 = vsyncpa [#allocation7 + $0x1], 0 }
   0x2   :  { %13 = vsyncpa [#allocation10], 0 }
   0x3   :  { %14 = vsyncpa [#allocation8], 0 }
   0x4   :  { %16 = vsyncpa [#allocation8 + $0x1], 0  ;;  %s1244_s18 = smov 0   ;;  %s1246_s19 = smov 0  }
   0x5   :  { %s1248_s20 = smov 0   ;;  %s1250_s21 = smov 0  }
   0x6 LB: > { %s1265_s22 = sadd.s32 4294967295, %s1201_s21   ;;  %s756_s23 = sadd.s32 4294967294, %s1201_s21   ;;  %s1201_s21 = sphi %s1250_s21, %s1542_s21   ;;  %s1197_s20 = sphi %s1248_s20, %s1541_s20   ;;  %s1193_s19 = sphi %s1246_s19, %s1540_s19   ;;  %s1189_s18 = sphi %s1244_s18, %s1539_s18  }
   0x7   : > { %p42_p0 = scmp.ne.s32.totalorder %s1193_s19, %s1189_s18  ;;  %p1523_p1 = scmp.eq.s32.totalorder %s1265_s22, 0 }
   0x8   : > { %p156_p3 = scmp.eq.s32.totalorder %s756_s23, 1  ;;  %p757_p5 = scmp.ge.s32.totalorder %s1201_s21, 1 }
   0x9   : > { %p1274_p4 = por %p1523_p1, %p42_p0  ;;  %p163_p7 = scmp.lt.s32.totalorder %s1201_s21, 3 }
   0xa   : > { %p1279_p6 = por %p156_p3, %p42_p0  ;;  %s1203_s27 = smov [#allocation9]  }
   0xb   : > { %s1526_s24 = scalar_select %p1274_p4, 1, 0 }
   0xc   : > { %s1527_s25 = scalar_select %p1279_p6, 1, 0 }
   0xd   : > { %p1284_p8 = pnand %p757_p5, %p163_p7  ;;  %s175_s28 = sshll.u32 %s1203_s27, 4  ;;  %s1288_s28 = int_to_ptr.vmem [resolvable:$true] %s175_s28 }
   0xe   : > { %s1204_s30 = smov [#allocation11]   ;;  %s1045_s9 = scalar_lea.hbm %s1518_s1, 3072 }
   0xf   : > { %p983_p9 = pneg %p1284_p8  ;;  %s191_s6 = sshll.u32 %s1204_s30, 4  ;;  %s1299_s6 = int_to_ptr.vmem [resolvable:$true] %s191_s6 }
  0x10   : > { %p1046_p12 = scmp.ne.s32.totalorder %s1518_s1, %s1045_s9  ;;  %p1052_p5 = scmp.lt.u32.totalorder %s1045_s9, %s1518_s1 }
  0x11   : > { %p1295_p11 = pnand %p983_p9, %p1523_p1 }
  0x13   : > { %p1047_p13 = pneg %p1295_p11 }
  0x15   : > { %p1048_p0 = pnand %p1047_p13, %p1046_p12 }
  0x17   : > { %p1049_p3 = pneg %p1048_p0 }
  0x19   : > { %p1054_p7 = pnand %p1052_p5, %p1049_p3 }
  0x1b   : > { %1057 = shalt.err (!%p1054_p7)
}
  0x1c   : > { %s1058_s14 = scalar_lea.vmem %s1288_s28, 3072  ;;  %p1066_p2 = scmp.lt.s32.totalorder %s1288_s28, %s1288_s28 }
  0x1d   : > { %p1059_p9 = scmp.ne.s32.totalorder %s1288_s28, %s1058_s14  ;;  %p1067_p12 = scmp.lt.s32.totalorder %s1058_s14, %s1058_s14 }
  0x1f   : > { %p1061_p10 = pnand %p1059_p9, %p1047_p13  ;;  %p1068_p0 = por %p1067_p12, %p1066_p2 }
  0x21   : > { %p1062_p1 = pneg %p1061_p10 }
  0x23   : > { %p1069_p6 = pnand %p1068_p0, %p1062_p1 }
  0x25   : > { %1072 = shalt.err (!%p1069_p6)
}
  0x26   : > { %s1205_s15 = smov 128   ;;  %s1206_s16 = smov 8  }
  0x27   : > { %986 = dma.hbm_to_vmem [thread:$0]  (!%p1295_p11), %s1518_s1, 3072, %s1288_s28, [#allocation10], %s1205_s15, %s1205_s15, %s1206_s16  }
  0x28   : > { %s1073_s7 = scalar_lea.hbm %s1520_s3, 6144 }
  0x29   : > { %p1074_p1 = scmp.ne.s32.totalorder %s1520_s3, %s1073_s7  ;;  %p1080_p10 = scmp.lt.u32.totalorder %s1073_s7, %s1520_s3 }
  0x2b   : > { %p1076_p2 = pnand %p1074_p1, %p1047_p13 }
  0x2d   : > { %p1077_p6 = pneg %p1076_p2 }
  0x2f   : > { %p1082_p3 = pnand %p1080_p10, %p1077_p6 }
  0x31   : > { %1085 = shalt.err (!%p1082_p3)
}
  0x32   : > { %s1086_s28 = scalar_lea.vmem %s1299_s6, 6144  ;;  %p1094_p12 = scmp.lt.s32.totalorder %s1299_s6, %s1299_s6 }
  0x33   : > { %p1087_p5 = scmp.ne.s32.totalorder %s1299_s6, %s1086_s28  ;;  %p1095_p0 = scmp.lt.s32.totalorder %s1086_s28, %s1086_s28 }
  0x35   : > { %p1089_p7 = pnand %p1087_p5, %p1047_p13  ;;  %p1096_p1 = por %p1095_p0, %p1094_p12 }
  0x37   : > { %p1090_p9 = pneg %p1089_p7 }
  0x39   : > { %p1097_p2 = pnand %p1096_p1, %p1090_p9 }
  0x3b   : > { %1100 = shalt.err (!%p1097_p2)
}
  0x3c   : > { %989 = dma.hbm_to_vmem [thread:$0]  (!%p1295_p11), %s1520_s3, 6144, %s1299_s6, [#allocation10], %s1205_s15, %s1205_s15, %s1206_s16  }
  0x3d   : > { %s1360_s29 = sadd.s32 1, %s1201_s21   ;;  %s29_s14 = sadd.s32 1, %s1197_s20 }
  0x3e   : > { %s26_s17 = ssub.s32 %s1201_s21, %s1360_s29  ;;  %p36_p13 = scmp.ne.s32.totalorder %s1197_s20, %s1193_s19 }
  0x3f   : > { %p27_p6 = scmp.eq.s32.totalorder %s26_s17, 0  ;;  %p37_p10 = scmp.eq.s32.totalorder %s1201_s21, 0 }
  0x40   : > { %p1530_p3 = scmp.eq.s32.totalorder %s1265_s22, 1  ;;  %p1000_p7 = scmp.lt.s32.totalorder %s1201_s21, 2 }
  0x41   : > { %s1376_s27 = scalar_select %p27_p6, %s1197_s20, %s29_s14  }
  0x42   : > { %p1370_p5 = por %p1530_p3, %p36_p13  ;;  %p38_p9 = por %p37_p10, %p36_p13 }
  0x43   : > { %s208_s30 = sand.u32 1, %s1197_s20   ;;  %s778_s6 = sshll.u32 %s1201_s21, 8 }
  0x44   : > { %s1531_s23 = scalar_select %p1370_p5, 1, 0 }
  0x45   : > { %s761_s7 = sshll.u32 %s208_s30, 4  ;;  %s1383_s10 = scalar_lea.hbm %s1517_s0, %s778_s6 }
  0x46   : > { %s212_s11 = scalar_lea.vmem [#allocation6], %s761_s7  ;;  %p1387_p11 = pnand %p1000_p7, %p38_p9 }
  0x47   : > { %s219_s28 = sshll.u32 %s212_s11, 4  ;;  %s1391_s13 = scalar_lea.sflag [#allocation7], %s208_s30  ;;  %s1385_s28 = int_to_ptr.vmem [resolvable:$true] %s219_s28 }
  0x48   : > { %s1101_s14 = scalar_lea.hbm %s1383_s10, 256  ;;  %p1103_p0 = pneg %p1387_p11 }
  0x49   : > { %p1102_p12 = scmp.ne.s32.totalorder %s1383_s10, %s1101_s14  ;;  %s1106_s6 = scalar_lea.hbm %s1517_s0, 512 }
  0x4a   : > { %p1107_p13 = scmp.lt.u32.totalorder %s1383_s10, %s1517_s0  ;;  %p1108_p6 = scmp.lt.u32.totalorder %s1106_s6, %s1101_s14 }
  0x4b   : > { %p1104_p1 = pnand %p1103_p0, %p1102_p12  ;;  %p1110_p3 = scmp.lt.u32.totalorder %s1101_s14, %s1383_s10 }
  0x4c   : > { %p1109_p10 = por %p1108_p6, %p1107_p13 }
  0x4d   : > { %p1105_p2 = pneg %p1104_p1 }
  0x4e   : > { %p1111_p7 = por %p1110_p3, %p1109_p10 }
  0x50   : > { %p1112_p9 = pnand %p1111_p7, %p1105_p2 }
  0x52   : > { %1115 = shalt.err (!%p1112_p9)
}
  0x53   : > { %s1116_s30 = scalar_lea.vmem %s1385_s28, 256  ;;  %s1207_s11 = smov [#allocation6]  }
  0x54   : > { %p1117_p12 = scmp.ne.s32.totalorder %s1385_s28, %s1116_s30  ;;  %s1121_s17 = sshll.u32 %s1207_s11, 4  ;;  %s1122_s17 = int_to_ptr.vmem [resolvable:$false] %s1121_s17 }
  0x55   : > { %s1123_s7 = scalar_lea.vmem %s1122_s17, 512  ;;  %p1124_p4 = scmp.lt.s32.totalorder %s1385_s28, %s1122_s17 }
  0x56   : > { %p1119_p1 = pnand %p1117_p12, %p1103_p0  ;;  %p1125_p13 = scmp.lt.s32.totalorder %s1123_s7, %s1116_s30 }
  0x58   : > { %p1120_p5 = pneg %p1119_p1  ;;  %p1126_p6 = por %p1125_p13, %p1124_p4 }
  0x5a   : > { %p1127_p10 = pnand %p1126_p6, %p1120_p5 }
  0x5c   : > { %1130 = shalt.err (!%p1127_p10)
}
  0x5d   : > { %993 = dma.hbm_to_vmem [thread:$0]  (!%p1387_p11), %s1383_s10, 256, %s1385_s28, %s1391_s13, %s1205_s15, %s1205_s15, %s1206_s16  }
  0x5e   : > { %231 = sbr.rel (%p1284_p8) target bundleno = 727 (0x2d7), region = 40  ;;  %s1425_s14 = sand.u32 (!%p1284_p8), 1, %s1193_s19  }
  0x5f   : > { %s765_s6 = sshll.u32 (!%p1284_p8), %s1425_s14, 4  ;;  %s234_s8 = scalar_lea.sflag (!%p1284_p8), [#allocation7], %s1425_s14 }
  0x60   : > { %s237_s12 = scalar_lea.vmem (!%p1284_p8), [#allocation6], %s765_s6  ;;  %p1533_p4 = scmp.ne.s32.totalorder (!%p1284_p8), %s1526_s24, 0 }
  0x65   : > { %1176 = dma.done.wait (%p1533_p4), %s234_s8, 256  }
  0x66   : > { %1178 = vsyncadd (%p1533_p4), %s234_s8, 4294967040  ;;  %p1534_p5 = scmp.eq.s32.totalorder %s1265_s22, 0 }
  0x68   : > { %1180 = dma.done.wait (%p1534_p5), [#allocation10], 9216   ;;  %p1535_p8 = pmov %p1534_p5 }
  0x69   : > { %vm272_vm0 = vcmask 516096   ;;  %v1208_v0 = vmov 0.0|0.0   ;;  %v1209_v1 = vmov 0.0   ;;  %vm279_vm1 = vcmask 523264   ;;  %v277_v2 = vld [vmem:[%s237_s12] sm:$0xff]  ;;  %v278_v3 = vld [vmem:[%s237_s12 + $0x8] sm:$0xff] }
  0x6a   : > { %1182 = vsyncadd (%p1535_p8), [#allocation10], 4294958080  ;;  %871 = vmatprep.subr.bf16.mxu0 %v1208_v0  ;;  %273 = vst.msk [vmem:[#allocation2] sm:$0x1] %vm272_vm0, %v1209_v1  ;;  %v307_v4 = vld [vmem:[#allocation9] sm:$0xff]  ;;  %v308_v5 = vld [vmem:[#allocation9 + $0x8] sm:$0xff] }
  0x6b   : > { %274 = vst.msk [vmem:[#allocation2 + $0x11] sm:$0x1] %vm272_vm0, %v1209_v1  ;;  %275 = vst [vmem:[#allocation3] sm:$0x1] %v1209_v1  ;;  %v309_v6 = vld [vmem:[#allocation9 + $0x10] sm:$0xff]  ;;  %v310_v7 = vld [vmem:[#allocation9 + $0x18] sm:$0xff]  ;;  %v872_v8 = vpack.c.bf16 %v308_v5, %v307_v4 }
  0x6c   : > { %276 = vst [vmem:[#allocation3 + $0x11] sm:$0x1] %v1209_v1  ;;  %280 = vst.msk [vmem:[#allocation2 + $0x1] sm:$0xff] %vm279_vm1, %v277_v2  ;;  %v875_v9 = vpack.c.bf16 %v310_v7, %v309_v6  ;;  %v311_v10 = vld [vmem:[#allocation9 + $0x20] sm:$0xff]  ;;  %v312_v11 = vld [vmem:[#allocation9 + $0x28] sm:$0xff]  ;;  %s1210_s24 = smov 64  }
  0x6d   : > { %281 = vst.msk [vmem:[#allocation2 + $0x9] sm:$0xff] %vm279_vm1, %v278_v3  ;;  %873 = vmatpush1.bf16.msra.mxu0 %v872_v8  ;;  %v878_v13 = vpack.c.bf16 %v312_v11, %v311_v10  ;;  %v313_v14 = vld [vmem:[#allocation9 + $0x30] sm:$0xff]  ;;  %v314_v17 = vld [vmem:[#allocation9 + $0x38] sm:$0xff]  ;;  %v457_v21 = vld [vmem:[#allocation11 + $0x80] sm:$0xff]  ;;  %vm296_vm2 = vcmask 1048064   ;;  %s271_s28 = scalar_lea.vmem [#allocation12], %s765_s6 }
  0x6e   : > { %874 = vmatprep.subr.bf16.mxu0 %v1208_v0  ;;  %v315_v22 = vld [vmem:[#allocation9 + $0x40] sm:$0xff]  ;;  %v316_v23 = vld [vmem:[#allocation9 + $0x48] sm:$0xff]  ;;  %v881_v27 = vpack.c.bf16 %v314_v17, %v313_v14  ;;  %v459_v30 = vld [vmem:[#allocation11 + $0x90] sm:$0xff]  ;;  %s664_s13 = sshll.u32 %s271_s28, 4  ;;  %s779_s9 = sshll.u32 %s1265_s22, 8  ;;  %s1468_s13 = int_to_ptr.vmem [resolvable:$true] %s664_s13 }
  0x6f   : > { %v458_v24 = vld [vmem:[#allocation11 + $0x88] sm:$0xff]  ;;  %v441_v25 = vld [vmem:[#allocation11] sm:$0xff]  ;;  %v460_v31 = vld [vmem:[#allocation11 + $0x98] sm:$0xff]  ;;  %v884_v38 = vpack.c.bf16 %v316_v23, %v315_v22  ;;  %s1473_s17 = scalar_lea.hbm %s1522_s5, %s779_s9  ;;  %s651_s7 = scalar_lea.sflag [#allocation8], %s1425_s14 }
  0x70   : > { %v442_v26 = vld [vmem:[#allocation11 + $0x8] sm:$0xff]  ;;  %v907_v28 = vpack.c.bf16 %v458_v24, %v457_v21  ;;  %v443_v32 = vld [vmem:[#allocation11 + $0x10] sm:$0xff]  ;;  %v911_v33 = vpack.c.bf16 %v460_v31, %v459_v30  ;;  %v444_v34 = vld [vmem:[#allocation11 + $0x18] sm:$0xff]  ;;  %s1131_s6 = scalar_lea.vmem %s1468_s13, 256  ;;  %p1536_p0 = scmp.ne.s32.totalorder %s1531_s23, 0 }
  0x71   : > { %876 = vmatpush1.bf16.msra.mxu0 %v875_v9  ;;  %v909_v29 = vpack.c.bf16 %v442_v26, %v441_v25  ;;  %v461_v35 = vld [vmem:[#allocation11 + $0xa0] sm:$0xff]  ;;  %v462_v36 = vld [vmem:[#allocation11 + $0xa8] sm:$0xff]  ;;  %v913_v37 = vpack.c.bf16 %v444_v34, %v443_v32  ;;  %v317_v39 = vld [vmem:[#allocation9 + $0x50] sm:$0xff]  ;;  %p1132_p11 = scmp.ne.s32.totalorder %s1468_s13, %s1131_s6  ;;  %s1211_s22 = smov [#allocation12]  }
  0x72   : > { %877 = vmatprep.subr.bf16.mxu0 %v1208_v0  ;;  %908 = vmatprep.subr.bf16.mxu1 %v907_v28  ;;  %v915_v40 = vpack.c.bf16 %v462_v36, %v461_v35  ;;  %v445_v41 = vld [vmem:[#allocation11 + $0x20] sm:$0xff]  ;;  %v446_v42 = vld [vmem:[#allocation11 + $0x28] sm:$0xff]  ;;  %v318_v43 = vld [vmem:[#allocation9 + $0x58] sm:$0xff]  ;;  %s1135_s8 = sshll.u32 %s1211_s22, 4  ;;  %s1136_s8 = int_to_ptr.vmem [resolvable:$false] %s1135_s8 }
  0x73   : > { %v286_v12 = vld [vmem:[#allocation2 + $0x1] sm:$0xff]  ;;  %910 = vmatpush3.bf16.msra.mxu1 %v909_v29  ;;  %v917_v47 = vpack.c.bf16 %v446_v42, %v445_v41  ;;  %v887_v48 = vpack.c.bf16 %v318_v43, %v317_v39  ;;  %v319_v49 = vld [vmem:[#allocation9 + $0x60] sm:$0xff]  ;;  %v320_v53 = vld [vmem:[#allocation9 + $0x68] sm:$0xff]  ;;  %p1133_p2 = pnand %p1132_p11, %p1536_p0  ;;  %s1137_s12 = scalar_lea.vmem %s1136_s8, 512 }
  0x74   : > { %v282_v15 = vld [vmem:[#allocation2] sm:$0xff]  ;;  %290 = vrot.lane.b32.xlu0 %v286_v12, %s1210_s24  ;;  %v287_v16 = vld [vmem:[#allocation2 + $0x9] sm:$0xff]  ;;  %912 = vmatprep.subr.bf16.mxu1 %v911_v33  ;;  %v466_v55 = vld [vmem:[#allocation11 + $0xc8] sm:$0xff]  ;;  %v890_v57 = vpack.c.bf16 %v320_v53, %v319_v49  ;;  %p1138_p7 = scmp.lt.s32.totalorder %s1468_s13, %s1136_s8  ;;  %p1139_p9 = scmp.lt.s32.totalorder %s1137_s12, %s1131_s6 }
  0x75   : > { %284 = vst.msk [vmem:[#allocation4] sm:$0xff] %vm279_vm1, %v282_v15  ;;  %v283_v18 = vld [vmem:[#allocation2 + $0x8] sm:$0xff]  ;;  %879 = vmatpush1.bf16.msra.mxu0 %v878_v13  ;;  %v463_v44 = vld [vmem:[#allocation11 + $0xb0] sm:$0xff]  ;;  %v465_v54 = vld [vmem:[#allocation11 + $0xc0] sm:$0xff]  ;;  %p1134_p3 = pneg %p1133_p2 }
  0x76   : > { %285 = vst.msk [vmem:[#allocation4 + $0x10] sm:$0xff] %vm279_vm1, %v283_v18  ;;  %v299_v19 = vld [vmem:[#allocation2 + $0x2] sm:$0xff]  ;;  %v300_v20 = vld [vmem:[#allocation2 + $0xa] sm:$0xff]  ;;  %880 = vmatprep.subr.bf16.mxu0 %v1208_v0  ;;  %v923_v58 = vpack.c.bf16 %v466_v55, %v465_v54  ;;  %v450_v60 = vld [vmem:[#allocation11 + $0x48] sm:$0xff]  ;;  %p1140_p12 = por %p1139_p9, %p1138_p7 }
  0x77   : > { %301 = vst.msk [vmem:[#allocation4 + $0x8] sm:$0xff] %vm279_vm1, %v299_v19  ;;  %302 = vst.msk [vmem:[#allocation4 + $0x18] sm:$0xff] %vm279_vm1, %v300_v20  ;;  %v464_v45 = vld [vmem:[#allocation11 + $0xb8] sm:$0xff]  ;;  %914 = vmatpush3.bf16.msra.mxu1 %v913_v37  ;;  %v447_v51 = vld [vmem:[#allocation11 + $0x30] sm:$0xff] }
  0x78   : > { %292 = vrot.lane.b32.xlu0 %v287_v16, %s1210_s24  ;;  %916 = vmatprep.subr.bf16.mxu1 %v915_v40  ;;  %v919_v50 = vpack.c.bf16 %v464_v45, %v463_v44  ;;  %v448_v52 = vld [vmem:[#allocation11 + $0x38] sm:$0xff]  ;;  %v449_v59 = vld [vmem:[#allocation11 + $0x40] sm:$0xff]  ;;  %v321_v61 = vld [vmem:[#allocation9 + $0x70] sm:$0xff]  ;;  %p1141_p1 = pnand %p1140_p12, %p1134_p3 }
  0x79   : > { %882 = vmatpush1.bf16.msra.mxu0 %v881_v27  ;;  %v921_v56 = vpack.c.bf16 %v448_v52, %v447_v51  ;;  %v322_v62 = vld [vmem:[#allocation9 + $0x78] sm:$0xff]  ;;  %v925_v63 = vpack.c.bf16 %v450_v60, %v449_v59  ;;  %v323_v2 = vld [vmem:[#allocation9 + $0x80] sm:$0xff]  ;;  %v324_v3 = vld [vmem:[#allocation9 + $0x88] sm:$0xff] }
  0x7a   : > { %883 = vmatprep.subr.bf16.mxu0 %v1208_v0  ;;  %v893_v1 = vpack.c.bf16 %v322_v62, %v321_v61  ;;  %v896_v4 = vpack.c.bf16 %v324_v3, %v323_v2  ;;  %v325_v5 = vld [vmem:[#allocation9 + $0x90] sm:$0xff]  ;;  %v326_v6 = vld [vmem:[#allocation9 + $0x98] sm:$0xff]  ;;  %v327_v8 = vld [vmem:[#allocation9 + $0xa0] sm:$0xff] }
  0x7b   : > { %918 = vmatpush3.bf16.msra.mxu1 %v917_v47  ;;  %v899_v7 = vpack.c.bf16 %v326_v6, %v325_v5  ;;  %v328_v9 = vld [vmem:[#allocation9 + $0xa8] sm:$0xff]  ;;  %v329_v11 = vld [vmem:[#allocation9 + $0xb0] sm:$0xff]  ;;  %v330_v12 = vld [vmem:[#allocation9 + $0xb8] sm:$0xff] }
  0x7c   : > { %920 = vmatprep.subr.bf16.mxu1 %v919_v50  ;;  %v902_v10 = vpack.c.bf16 %v328_v9, %v327_v8  ;;  %v905_v13 = vpack.c.bf16 %v330_v12, %v329_v11  ;;  %v467_v19 = vld [vmem:[#allocation11 + $0xd0] sm:$0xff]  ;;  %v468_v20 = vld [vmem:[#allocation11 + $0xd8] sm:$0xff]  ;;  %v470_v25 = vld [vmem:[#allocation11 + $0xe8] sm:$0xff] }
  0x7d   : > { %885 = vmatpush1.bf16.msra.mxu0 %v884_v38  ;;  %v927_v21 = vpack.c.bf16 %v468_v20, %v467_v19  ;;  %v451_v22 = vld [vmem:[#allocation11 + $0x50] sm:$0xff]  ;;  %v452_v23 = vld [vmem:[#allocation11 + $0x58] sm:$0xff]  ;;  %v453_v27 = vld [vmem:[#allocation11 + $0x60] sm:$0xff] }
  0x7e   : > { %v304_v46 = vld [vmem:[#allocation4 + $0x8] sm:$0xff]  ;;  %886 = vmatprep.subr.bf16.mxu0 %v1208_v0  ;;  %v306_v16 = vld [vmem:[#allocation4 + $0x18] sm:$0xff]  ;;  %v929_v24 = vpack.c.bf16 %v452_v23, %v451_v22  ;;  %v471_v30 = vld [vmem:[#allocation11 + $0xf0] sm:$0xff] }
  0x7f   : > { %770 = vmatprep.mubr.msk.f32.mxu0 %vm279_vm1, %v304_v46  ;;  %922 = vmatpush3.bf16.msra.mxu1 %v921_v56  ;;  %v454_v28 = vld [vmem:[#allocation11 + $0x68] sm:$0xff]  ;;  %v472_v31 = vld [vmem:[#allocation11 + $0xf8] sm:$0xff]  ;;  %v455_v33 = vld [vmem:[#allocation11 + $0x70] sm:$0xff] }
  0x80   : > { %924 = vmatprep.subr.bf16.mxu1 %v923_v58  ;;  %v933_v29 = vpack.c.bf16 %v454_v28, %v453_v27  ;;  %v935_v32 = vpack.c.bf16 %v472_v31, %v471_v30  ;;  %v456_v34 = vld [vmem:[#allocation11 + $0x78] sm:$0xff]  ;;  %v473_v36 = vld [vmem:[#allocation11 + $0x100] sm:$0xff]  ;;  %v474_v37 = vld [vmem:[#allocation11 + $0x108] sm:$0xff] }
  0x81   : > { %888 = vmatpush1.bf16.msra.mxu0 %v887_v48  ;;  %v937_v35 = vpack.c.bf16 %v456_v34, %v455_v33  ;;  %v939_v38 = vpack.c.bf16 %v474_v37, %v473_v36  ;;  %v769_v39 = vld [vmem:[%s1519_s2] ss:$0 sm:$0xff]  ;;  %v476_v49 = vld [vmem:[#allocation11 + $0x118] sm:$0xff]  ;;  %v477_v52 = vld [vmem:[#allocation11 + $0x120] sm:$0xff] }
  0x82   : > { %889 = vmatprep.subr.bf16.mxu0 %v1208_v0  ;;  %v475_v48 = vld [vmem:[#allocation11 + $0x110] sm:$0xff]  ;;  %v478_v53 = vld [vmem:[#allocation11 + $0x128] sm:$0xff]  ;;  %v480_v58 = vld [vmem:[#allocation11 + $0x138] sm:$0xff] }
  0x83   : > { %926 = vmatpush3.bf16.msra.mxu1 %v925_v63  ;;  %v943_v50 = vpack.c.bf16 %v476_v49, %v475_v48  ;;  %v947_v54 = vpack.c.bf16 %v478_v53, %v477_v52  ;;  %v479_v55 = vld [vmem:[#allocation11 + $0x130] sm:$0xff]  ;;  %v481_v60 = vld [vmem:[#allocation11 + $0x140] sm:$0xff]  ;;  %v482_v61 = vld [vmem:[#allocation11 + $0x148] sm:$0xff] }
  0x84   : > { %928 = vmatprep.subr.bf16.mxu1 %v927_v21  ;;  %v951_v59 = vpack.c.bf16 %v480_v58, %v479_v55  ;;  %v955_v62 = vpack.c.bf16 %v482_v61, %v481_v60  ;;  %v483_v63 = vld [vmem:[#allocation11 + $0x150] sm:$0xff]  ;;  %v485_v3 = vld [vmem:[#allocation11 + $0x160] sm:$0xff] }
  0x85   : > { %891 = vmatpush1.bf16.msra.mxu0 %v890_v57  ;;  %v487_v6 = vld [vmem:[#allocation11 + $0x170] sm:$0xff] }
  0x86   : > { %892 = vmatprep.subr.bf16.mxu0 %v1208_v0 }
  0x87   : > { %930 = vmatpush3.bf16.msra.mxu1 %v929_v24 }
  0x89   : > { %894 = vmatpush1.bf16.msra.mxu0 %v893_v1  ;;  %v484_v1 = vld [vmem:[#allocation11 + $0x158] sm:$0xff] }
  0x8a   : > { %895 = vmatprep.subr.bf16.mxu0 %v1208_v0  ;;  %v959_v2 = vpack.c.bf16 %v484_v1, %v483_v63 }
  0x8d   : > { %897 = vmatpush1.bf16.msra.mxu0 %v896_v4  ;;  %v486_v4 = vld [vmem:[#allocation11 + $0x168] sm:$0xff] }
  0x8e   : > { %898 = vmatprep.subr.bf16.mxu0 %v1208_v0  ;;  %v963_v5 = vpack.c.bf16 %v486_v4, %v485_v3 }
  0x91   : > { %900 = vmatpush1.bf16.msra.mxu0 %v899_v7  ;;  %v488_v7 = vld [vmem:[#allocation11 + $0x178] sm:$0xff] }
  0x92   : > { %901 = vmatprep.subr.bf16.mxu0 %v1208_v0  ;;  %v967_v8 = vpack.c.bf16 %v488_v7, %v487_v6 }
  0x95   : > { %903 = vmatpush1.bf16.msra.mxu0 %v902_v10 }
  0x96   : > { %904 = vmatprep.subr.bf16.mxu0 %v1208_v0  ;;  %v469_v0 = vld [vmem:[#allocation11 + $0xe0] sm:$0xff] }
  0x97   : > { %v931_v26 = vpack.c.bf16 %v470_v25, %v469_v0 }
  0x99   : > { %906 = vmatpush1.bf16.msra.mxu0 %v905_v13  ;;  %932 = vmatprep.subr.bf16.mxu1 %v931_v26 }
  0x9a   : > { %934 = vmatpush3.bf16.msra.mxu1 %v933_v29 }
  0x9b   : > { %936 = vmatprep.subr.bf16.mxu1 %v935_v32 }
  0x9e   : > { %938 = vmatpush3.bf16.msra.mxu1 %v937_v35 }
  0x9f   : > { %940 = vmatprep.subr.bf16.mxu1 %v939_v38 }
  0xe6   : > { %v291_v14 = vpop.permute.xlu0 %290 }
  0xe7   : > { %297 = vst.msk [vmem:[#allocation4] sm:$0xff] %vm296_vm2, %v291_v14 }
  0xea   : > { %v293_v15 = vpop.permute.xlu0 %292 }
  0xeb   : > { %298 = vst.msk [vmem:[#allocation4 + $0x10] sm:$0xff] %vm296_vm2, %v293_v15 }
  0xee   : > { %v303_v17 = vld [vmem:[#allocation4] sm:$0xff] }
  0xef   : > { %409 = vmatmul.mubr.f32.vlgmr.msra.gmra.mrb[0].mxu0 %v303_v17 }
  0xf0   : > { %771 = vmatprep.mubr.msk.f32.mxu0 %vm279_vm1, %v306_v16  ;;  %v772_v16 = vld [vmem:[%s1521_s4] ss:$0 sm:$0xff] }
  0xf2   : > { %v305_v18 = vld [vmem:[#allocation4 + $0x10] sm:$0xff] }
  0xf3   : > { %414 = vmatmul.mubr.f32.gmra.mrb[2].mxu0 %v305_v18 }
 0x1c2   : > { %v410_v40 = vpop.f32.mrb[0].mxu0 }
 0x1c3   : > { %v411_v41 = vadd.f32 %v769_v39, %v410_v40  ;;  %v412_v42 = vpop.f32.mrb[1].mxu0 }
 0x1c5   : > { %v419_v43 = vmax.f32 %v411_v41, 0.0 }
 0x1c6   : > { %v415_v44 = vpop.f32.mrb[2].mxu0 }
 0x1c7   : > { %421 = vst [vmem:[#allocation3 + $0x1] sm:$0xff] %v419_v43  ;;  %v416_v45 = vadd.f32 %v769_v39, %v415_v44  ;;  %560 = vmatprep.mubr.f32.mxu1 %v419_v43  ;;  %v417_v46 = vpop.f32.mrb[3].mxu0 }
 0x1c9   : > { %v420_v47 = vmax.f32 %v416_v45, 0.0 }
 0x1cb   : > { %422 = vst [vmem:[#allocation3 + $0x9] sm:$0xff] %v420_v47 }
 0x1ce   : > { %v423_v51 = vld [vmem:[#allocation3] sm:$0xff] }
 0x1cf   : > { %561 = vmatmul.mubr.f32.vlgmr.msra.gmra.mrb[0].mxu1 %v423_v51 }
 0x1d0   : > { %942 = vmatpush3.bf16.msra.mxu1 %v939_v38  ;;  %565 = vmatprep.mubr.f32.mxu1 %v420_v47 }
 0x1d1   : > { %944 = vmatprep.subr.bf16.mxu1 %v943_v50 }
 0x1d2   : > { %v424_v56 = vld [vmem:[#allocation3 + $0x8] sm:$0xff] }
 0x1d3   : > { %v431_v57 = vld [vmem:[#allocation3 + $0x2] sm:$0xff]  ;;  %566 = vmatmul.mubr.f32.gmra.mrb[2].mxu1 %v424_v56  ;;  %v432_v9 = vld [vmem:[#allocation3 + $0xa] sm:$0xff] }
 0x1d4   : > { %946 = vmatpush3.bf16.msra.mxu1 %v943_v50  ;;  %868 = vmatprep.mubr.f32.mxu1 %v431_v57 }
 0x1d5   : > { %948 = vmatprep.subr.bf16.mxu1 %v947_v54 }
 0x1d8   : > { %950 = vmatpush3.bf16.msra.mxu1 %v947_v54 }
 0x1d9   : > { %952 = vmatprep.subr.bf16.mxu1 %v951_v59 }
 0x1dc   : > { %954 = vmatpush3.bf16.msra.mxu1 %v951_v59 }
 0x1dd   : > { %956 = vmatprep.subr.bf16.mxu1 %v955_v62 }
 0x1e0   : > { %958 = vmatpush3.bf16.msra.mxu1 %v955_v62 }
 0x1e1   : > { %960 = vmatprep.subr.bf16.mxu1 %v959_v2 }
 0x1e4   : > { %962 = vmatpush3.bf16.msra.mxu1 %v959_v2 }
 0x1e5   : > { %964 = vmatprep.subr.bf16.mxu1 %v963_v5 }
 0x1e8   : > { %966 = vmatpush3.bf16.msra.mxu1 %v963_v5 }
 0x1e9   : > { %968 = vmatprep.subr.bf16.mxu1 %v967_v8 }
 0x1ec   : > { %970 = vmatpush3.bf16.msra.mxu1 %v967_v8 }
 0x1ef   : > { %869 = vmatmul.mubr.f32.vlgmr.msra.gmra.mrb[4].mxu1 %v432_v9 }
 0x2a2   : > { %v812_v10 = vpop.f32.mrb[0].mxu1 }
 0x2a3   : > { %v813_v11 = vpop.f32.mrb[1].mxu1 }
 0x2a4   : > { %v814_v12 = vadd.f32 %v813_v11, %v812_v10 }
 0x2a6   : > { %v815_v13 = vpop.f32.mrb[2].mxu1  ;;  %v563_v19 = vadd.f32 %v814_v12, %v772_v16 }
 0x2a7   : > { %v816_v14 = vpop.f32.mrb[3].mxu1 }
 0x2a8   : > { %v817_v15 = vadd.f32 %v816_v14, %v815_v13 }
 0x2aa   : > { %v568_v17 = vadd.f32 %v817_v15, %v772_v16 }
 0x2c2   : > { %v870_v18 = vpop.f32.mrb[4].mxu1 }
 0x2c3   : > { %v643_v20 = vadd.f32 %v870_v18, %v568_v17  ;;  %v637_v21 = vpop.f32.mrb[5].mxu1 }
 0x2c4   : > { %v638_v22 = vadd.f32 %v637_v21, %v563_v19 }
 0x2c5   : > { %v647_v23 = vmax.f32 %v643_v20, 0.0 }
 0x2c6   : > { %v646_v24 = vmax.f32 %v638_v22, 0.0 }
 0x2c7   : > { %649 = vst [vmem:[%s271_s28 + $0x8] sm:$0xff] %v647_v23 }
 0x2c8   : > { %648 = vst [vmem:[%s271_s28] sm:$0xff] %v646_v24 }
 0x2c9   : > { %1144 = shalt.err (!%p1141_p1)
}
 0x2ca   : > { %s1145_s24 = scalar_lea.hbm %s1473_s17, 256  ;;  %s1149_s16 = scalar_lea.hbm %s1522_s5, 512 }
 0x2cb   : > { %p1146_p13 = scmp.ne.s32.totalorder %s1473_s17, %s1145_s24  ;;  %p1150_p4 = scmp.lt.u32.totalorder %s1473_s17, %s1522_s5 }
 0x2cc   : > { %p1151_p5 = scmp.lt.u32.totalorder %s1149_s16, %s1145_s24  ;;  %p1153_p11 = scmp.lt.u32.totalorder %s1145_s24, %s1473_s17 }
 0x2cd   : > { %p1147_p6 = pnand %p1146_p13, %p1536_p0 }
 0x2ce   : > { %p1152_p8 = por %p1151_p5, %p1150_p4 }
 0x2cf   : > { %p1148_p10 = pneg %p1147_p6 }
 0x2d0   : > { %p1154_p2 = por %p1153_p11, %p1152_p8 }
 0x2d2   : > { %p1155_p3 = pnand %p1154_p2, %p1148_p10 }
 0x2d4   : > { %1158 = shalt.err (!%p1155_p3)
}
 0x2d5   : > { %s1212_s9 = smov 128   ;;  %s1213_s30 = smov 8  }
 0x2d6   : > { %981 = dma.vmem_to_hbm [thread:$0]  (%p1536_p0), %s1468_s13, 256, %s1473_s17, %s651_s7, %s1212_s9, %s1212_s9, %s1213_s30  }
 0x2d7 PF: > { %s679_s11 = sand.u32 1, %s1189_s18   ;;  %p1537_p7 = scmp.ne.s32.totalorder %s1527_s25, 0 }
 0x2d8   : > { %p1538_p9 = scmp.ge.s32.totalorder %s1201_s21, 2  ;;  %s680_s6 = scalar_lea.sflag [#allocation8], %s679_s11 }
 0x2da   : > { %p995_p12 = pnand %p1538_p9, %p1537_p7 }
 0x2dc   : > { %1184 = dma.done.wait (!%p995_p12), %s680_s6, 256  }
 0x2dd   : > { %1186 = vsyncadd (!%p995_p12), %s680_s6, 4294967040  ;;  %p19_p1 = scmp.ge.s32.totalorder %s1360_s29, 4   ;;  %s1539_s18 = smov %s1193_s19 }
 0x2de   : > { %s1540_s19 = smov %s1197_s20  ;;  %s1541_s20 = smov %s1376_s27 }
 0x2df   : > { %s1542_s21 = smov %s1360_s29  ;;  %21 = sbr.rel (!%p19_p1) target bundleno = 6 (0x6), region = 93 }
 0x2e6   :  { %685 = vsyncpa [#allocation7], 1 }
 0x2e7   :  { %687 = vsyncpa [#allocation7 + $0x1], 1 }
 0x2e8   :  { %688 = vsyncpa [#allocation10], 1 }
 0x2e9   :  { %689 = vsyncpa [#allocation8], 1 }
 0x2ea   :  { %691 = vsyncpa [#allocation8 + $0x1], 1 }

</bundles_post_ra>
